<compile_context>
chip_gen: v5e
topology: v5e:2x2
jax: 0.10.0
libtpu: 0.0.40
codegen_flags: <defaults>
</compile_context>

<pallas_src>
import jax
import jax.numpy as jnp
from jax import lax
from jax.experimental import pallas as pl
from jax.experimental.pallas import tpu as pltpu

INPUT_SIZE = 11
HIDE_SIZE = 64
OUTPUT_SIZE = 1

_MEGACORE_MIN_ROWS = 2048  # split single-tile grids above this for v7x megacore


def _round_up(x, m):
    return (x + m - 1) // m * m


def mlp_kernel(x_ref, w1t_ref, b1_ref, w2_ref, b2_ref, o_ref):
    # fc1 in a transposed dataflow: hT[k, b] = sum_j w1T[k, j] * x[b, j].
    # A @ B^T contraction (rhs contracting dim = 1) lets the MXU consume the
    # (TB, 11) x tile directly and produces a lane-dense (64, TB) result.
    hT = lax.dot_general(
        w1t_ref[...], x_ref[...],
        dimension_numbers=(((1,), (1,)), ((), ())),
        preferred_element_type=jnp.float32)                    # (64, TB) f32
    hT = jnp.maximum(hT + b1_ref[...], 0.0)                    # bias (64,1) + ReLU
    # fc2 has N=1: keep it off the MXU.  VPU multiply + XLU sublane reduction
    # yields a lane-dense (1, TB) row (no masked stores, no (TB,1) relayout).
    y = jnp.sum(hT * w2_ref[...], axis=0, keepdims=True)       # (1, TB)
    y = y + b2_ref[0, 0]                                       # scalar bias (SMEM)
    # Sigmoid: exp and the approximate reciprocal both ride the EUP slot.
    o_ref[...] = pl.reciprocal(1.0 + jnp.exp(-y), approx=True).astype(o_ref.dtype)


def neural_network_forward(x, w1, b1, w2, b2, *, block_b=8192):
    """Forward pass of the PyTorch NeuralNetwork module.

    x : (B, 11) float32 or bfloat16 (supply bf16 upstream to halve HBM reads)
    w1: (11, 64)  (fc1.weight transposed)    b1: (64,) / (1, 64)
    w2: (64, 1)   (fc2.weight transposed)    b2: (1,)  / (1, 1)
    returns (B, 1) float32 probabilities.
    """
    assert x.ndim == 2 and x.shape[1] == INPUT_SIZE, x.shape
    B = x.shape[0]

    # Pad only to a sublane multiple (<= 7 rows); never to a multiple of the
    # batch tile (that would be a full extra pass over x in HBM).
    if B % 8 != 0:
        x = jnp.pad(x, ((0, 8 - B % 8), (0, 0)))
    bp = x.shape[0]

    # Batch tile: as large as reasonable (amortizes per-grid-step overhead),
    # multiple of 8 sublanes.  Ragged last tile handled by the cdiv grid.
    tb = min(_round_up(block_b, 8), bp)
    # Ensure >= 2 tiles for large batches so ("parallel",) shards across both
    # v7x TensorCores (no effect on single-TC v5e/v6e).
    if bp <= tb and bp >= _MEGACORE_MIN_ROWS:
        tb = _round_up((bp + 1) // 2, 8)
    grid_b = -(-bp // tb)

    # No wrapper-side cast of x.  Tiny weights are matched to x's dtype so the
    # MXU sees a single operand dtype; all post-matmul math stays in f32.
    in_dtype = x.dtype
    itemsize = jnp.dtype(in_dtype).itemsize
    w1t = jnp.asarray(w1, dtype=in_dtype).reshape(INPUT_SIZE, HIDE_SIZE).T  # (64, 11)
    b1_col = jnp.asarray(b1, dtype=jnp.float32).reshape(HIDE_SIZE, 1)       # (64, 1)
    w2_col = jnp.asarray(w2, dtype=jnp.float32).reshape(HIDE_SIZE, 1)       # (64, 1)
    b2_s = jnp.asarray(b2, dtype=jnp.float32).reshape(1, 1)                 # SMEM scalar

    # VMEM budget: lane-padded x tile (tb x 128) double-buffered, lane-dense
    # (1, tb) output double-buffered, plus f32 intermediates.  Never request
    # below the 32 MiB default, cap at 56 MiB (under v7x's 64 MiB physical).
    x_buf = tb * 128 * itemsize
    out_buf = max(tb, 128) * 32
    interm = 4 * HIDE_SIZE * tb * 4
    vmem_est = 2 * (x_buf + out_buf) + interm + (2 << 20)
    vmem_limit = int(min(max(1.5 * vmem_est, 32 << 20), 56 << 20))

    flops = 2 * bp * (INPUT_SIZE * HIDE_SIZE + HIDE_SIZE)
    bytes_accessed = (x.size * itemsize
                      + w1t.size * itemsize
                      + (b1_col.size + w2_col.size + b2_s.size) * 4
                      + grid_b * tb * 4)

    out = pl.pallas_call(
        mlp_kernel,
        out_shape=jax.ShapeDtypeStruct((grid_b, tb), jnp.float32),
        grid=(grid_b,),
        in_specs=[
            pl.BlockSpec((tb, INPUT_SIZE), lambda i: (i, 0)),           # x tile
            pl.BlockSpec((HIDE_SIZE, INPUT_SIZE), lambda i: (0, 0)),    # w1^T resident
            pl.BlockSpec((HIDE_SIZE, 1), lambda i: (0, 0)),             # b1 column
            pl.BlockSpec((HIDE_SIZE, 1), lambda i: (0, 0)),             # w2 column
            pl.BlockSpec(memory_space=pltpu.MemorySpace.SMEM),          # b2 scalar
        ],
        out_specs=pl.BlockSpec((1, tb), lambda i: (i, 0)),              # lane-dense
        compiler_params=pltpu.CompilerParams(
            dimension_semantics=("parallel",),
            vmem_limit_bytes=vmem_limit),
        cost_estimate=pl.CostEstimate(
            flops=flops, transcendentals=bp, bytes_accessed=bytes_accessed),
    )(x, w1t, b1_col, w2_col, b2_s)

    # (grid_b, tb) lane-dense slab -> (B, 1); rows beyond B (ragged tail) dropped.
    return out.reshape(-1, OUTPUT_SIZE)[:B]


def init_params(key):
    """Deterministic parameter init matching nn.Linear shapes.

    PyTorch stores fc.weight as (out, in); we build that then transpose to
    (in, out) for the wrapper's  x @ W  convention.
    """
    k1, k2, k3, k4 = jax.random.split(key, 4)
    bound1 = 1.0 / jnp.sqrt(INPUT_SIZE)
    w1_t = jax.random.uniform(k1, (HIDE_SIZE, INPUT_SIZE), jnp.float32, -bound1, bound1)
    b1 = jax.random.uniform(k2, (HIDE_SIZE,), jnp.float32, -bound1, bound1)
    bound2 = 1.0 / jnp.sqrt(HIDE_SIZE)
    w2_t = jax.random.uniform(k3, (OUTPUT_SIZE, HIDE_SIZE), jnp.float32, -bound2, bound2)
    b2 = jax.random.uniform(k4, (OUTPUT_SIZE,), jnp.float32, -bound2, bound2)
    return (w1_t.T, b1.reshape(1, HIDE_SIZE),
            w2_t.T, b2.reshape(1, OUTPUT_SIZE))


def reference_forward(x, w1, b1, w2, b2):
    h = jnp.maximum(x.astype(jnp.float32) @ w1 + b1, 0.0)
    return jax.nn.sigmoid(h @ w2 + b2)


if __name__ == "__main__":
    key = jax.random.PRNGKey(0)
    kx, kp = jax.random.split(key)
    w1, b1, w2, b2 = init_params(kp)

    # Small single-tile sanity case.
    x_small = jax.random.normal(kx, (8, INPUT_SIZE), jnp.float32)
    out_small = jax.block_until_ready(
        neural_network_forward(x_small, w1, b1, w2, b2))
    ref_small = reference_forward(x_small, w1, b1, w2, b2)
    assert out_small.shape == (8, OUTPUT_SIZE), out_small.shape
    assert jnp.allclose(out_small, ref_small, atol=2e-3), (
        jnp.abs(out_small - ref_small).max())

    # Multi-tile grid with a ragged (partial) last tile, f32 path.
    x_big = jax.random.normal(kx, (300, INPUT_SIZE), jnp.float32)
    ref_big = reference_forward(x_big, w1, b1, w2, b2)
    out_f32 = jax.block_until_ready(
        neural_network_forward(x_big, w1, b1, w2, b2, block_b=128))
    assert out_f32.shape == (300, OUTPUT_SIZE), out_f32.shape
    assert jnp.allclose(out_f32, ref_big, atol=2e-3), (
        jnp.abs(out_f32 - ref_big).max())

    # bf16-supplied-upstream path (no wrapper-side cast; documented precision trade-off).
    out_bf16 = jax.block_until_ready(
        neural_network_forward(x_big.astype(jnp.bfloat16), w1, b1, w2, b2, block_b=128))
    assert jnp.allclose(out_bf16, ref_big, atol=2e-2), (
        jnp.abs(out_bf16 - ref_big).max())

    print("KERNEL_OK")
</pallas_src>

<mosaic_0001>
module attributes {stable_mosaic.version = 11 : i64} {
  func.func @mlp_kernel(%arg0: i32, %arg1: memref<8x11xf32, #tpu.memory_space<vmem>>, %arg2: memref<64x11xf32, #tpu.memory_space<vmem>>, %arg3: memref<64x1xf32, #tpu.memory_space<vmem>>, %arg4: memref<64x1xf32, #tpu.memory_space<vmem>>, %arg5: memref<1x1xf32, #tpu.memory_space<smem>>, %arg6: memref<1x8xf32, #tpu.memory_space<vmem>>) attributes {dimension_semantics = [#tpu.dimension_semantics<parallel>], iteration_bounds = array<i64: 1>, scalar_prefetch = 0 : i64, scratch_operands = 0 : i64, tpu.core_type = #tpu.core_type<tc>, window_params = [{transform_indices = @transform_0, window_bounds = array<i64: 8, 11>}, {pipeline_mode = #tpu.pipeline_mode<synchronous>, transform_indices = @transform_1, window_bounds = array<i64: 64, 11>}, {pipeline_mode = #tpu.pipeline_mode<synchronous>, transform_indices = @transform_2, window_bounds = array<i64: 64, 1>}, {pipeline_mode = #tpu.pipeline_mode<synchronous>, transform_indices = @transform_3, window_bounds = array<i64: 64, 1>}, {transform_indices = @transform_4, window_bounds = array<i64: 1, 1>}, {transform_indices = @transform_5, window_bounds = array<i64: 1, 8>}]} {
    %c0 = arith.constant 0 : index
    %c0_0 = arith.constant 0 : index
    %0 = vector.load %arg2[%c0, %c0_0] : memref<64x11xf32, #tpu.memory_space<vmem>>, vector<64x11xf32>
    %c0_1 = arith.constant 0 : index
    %c0_2 = arith.constant 0 : index
    %1 = vector.load %arg1[%c0_1, %c0_2] : memref<8x11xf32, #tpu.memory_space<vmem>>, vector<8x11xf32>
    %cst = arith.constant dense<0.000000e+00> : vector<64x8xf32>
    %2 = tpu.matmul %0, %1, %cst {dimension_numbers = #tpu.dot_dimension_numbers<[1], [1], [0], [0], [0, 0, 1, 0], [], []>} : vector<64x11xf32>, vector<8x11xf32>, vector<64x8xf32> -> vector<64x8xf32>
    %c0_3 = arith.constant 0 : index
    %c0_4 = arith.constant 0 : index
    %3 = vector.load %arg3[%c0_3, %c0_4] : memref<64x1xf32, #tpu.memory_space<vmem>>, vector<64x1xf32>
    %4 = vector.broadcast %3 : vector<64x1xf32> to vector<64x8xf32>
    %5 = arith.addf %2, %4 : vector<64x8xf32>
    %cst_5 = arith.constant 0.000000e+00 : f32
    %6 = vector.broadcast %cst_5 : f32 to vector<64x8xf32>
    %7 = arith.maximumf %5, %6 : vector<64x8xf32>
    %c0_6 = arith.constant 0 : index
    %c0_7 = arith.constant 0 : index
    %8 = vector.load %arg4[%c0_6, %c0_7] : memref<64x1xf32, #tpu.memory_space<vmem>>, vector<64x1xf32>
    %9 = vector.broadcast %8 : vector<64x1xf32> to vector<64x8xf32>
    %10 = arith.mulf %7, %9 : vector<64x8xf32>
    %cst_8 = arith.constant dense<0.000000e+00> : vector<8xf32>
    %11 = vector.multi_reduction <add>, %10, %cst_8 [0] : vector<64x8xf32> to vector<8xf32>
    %12 = vector.shape_cast %11 : vector<8xf32> to vector<1x8xf32>
    %c0_9 = arith.constant 0 : index
    %c0_10 = arith.constant 0 : index
    %13 = memref.load %arg5[%c0_9, %c0_10] : memref<1x1xf32, #tpu.memory_space<smem>>
    %14 = vector.broadcast %13 : f32 to vector<1x8xf32>
    %15 = arith.addf %12, %14 : vector<1x8xf32>
    %cst_11 = arith.constant 0.000000e+00 : f32
    %16 = vector.broadcast %cst_11 : f32 to vector<1x8xf32>
    %17 = arith.subf %16, %15 : vector<1x8xf32>
    %18 = math.exp %17 : vector<1x8xf32>
    %cst_12 = arith.constant 1.000000e+00 : f32
    %19 = vector.broadcast %cst_12 : f32 to vector<1x8xf32>
    %20 = arith.addf %19, %18 : vector<1x8xf32>
    %21 = tpu.reciprocal %20 {approx = true} : vector<1x8xf32> -> vector<1x8xf32>
    %c0_13 = arith.constant 0 : index
    %c0_14 = arith.constant 0 : index
    %22 = vector.load %arg6[%c0_13, %c0_14] : memref<1x8xf32, #tpu.memory_space<vmem>>, vector<1x8xf32>
    tpu.vector_store %arg6[%c0_13, %c0_14], %21 {strides = array<i32>} : memref<1x8xf32, #tpu.memory_space<vmem>>, vector<1x8xf32>,
    return
  }
  func.func @transform_0(%arg0: i32) -> (i32, i32) {
    %c0_i32 = arith.constant 0 : i32
    %c0_i32_0 = arith.constant 0 : i32
    return %arg0, %c0_i32 : i32, i32
  }
  func.func @transform_1(%arg0: i32) -> (i32, i32) {
    %c0_i32 = arith.constant 0 : i32
    %c0_i32_0 = arith.constant 0 : i32
    %c0_i32_1 = arith.constant 0 : i32
    return %c0_i32, %c0_i32_0 : i32, i32
  }
  func.func @transform_2(%arg0: i32) -> (i32, i32) {
    %c0_i32 = arith.constant 0 : i32
    %c0_i32_0 = arith.constant 0 : i32
    %c0_i32_1 = arith.constant 0 : i32
    return %c0_i32, %c0_i32_0 : i32, i32
  }
  func.func @transform_3(%arg0: i32) -> (i32, i32) {
    %c0_i32 = arith.constant 0 : i32
    %c0_i32_0 = arith.constant 0 : i32
    %c0_i32_1 = arith.constant 0 : i32
    return %c0_i32, %c0_i32_0 : i32, i32
  }
  func.func @transform_4(%arg0: i32) -> (i32, i32) {
    %c0_i32 = arith.constant 0 : i32
    %c0_i32_0 = arith.constant 0 : i32
    %c0_i32_1 = arith.constant 0 : i32
    return %c0_i32, %c0_i32_0 : i32, i32
  }
  func.func @transform_5(%arg0: i32) -> (i32, i32) {
    %c0_i32 = arith.constant 0 : i32
    %c0_i32_0 = arith.constant 0 : i32
    return %arg0, %c0_i32 : i32, i32
  }
}

</mosaic_0001>

<bundles_post_ra>
// kernel: tpu_custom_call.1
= control target key start
LH: loop header
LB: loop body
LE: loop exit
PB: predicated region body
PF: predicated region fallthrough
CT: control target
= control target key end

     0   :  { %vm79_vm0 = vcmask 89088   ;;  %v307_v1 = vmov 0   ;;  %s440_s0 = inlined_call_operand.vmem [shape: f32[8,11], index: 0, kind: input, shape index: {}]   ;;  %s441_s1 = inlined_call_operand.vmem [shape: f32[64,11], index: 1, kind: input, shape index: {}]   ;;  %s442_s2 = inlined_call_operand.vmem [shape: f32[64,1], index: 2, kind: input, shape index: {}]   ;;  %s443_s3 = inlined_call_operand.vmem [shape: f32[64,1], index: 3, kind: input, shape index: {}]   ;;  %s444_s4 = inlined_call_operand.<no memory space> [shape: f32[1,1], index: 4, kind: input, shape index: {}]   ;;  %s445_s5 = inlined_call_operand.hbm [shape: f32[1,8], index: 5, kind: output, shape index: {}]  }
   0x1   :  { %v30_v0 = vld [vmem:[%s440_s0] sm:$0xff]  ;;  %276 = vset.pattern.permute.xlu2 %v307_v1  ;;  %275 = vset.pattern.permute.xlu1 %v307_v1  ;;  %v33_v3 = vld [vmem:[%s442_s2 + $0x10] sm:$0xff] }
   0x2   :  { %v156_v2 = vld [vmem:[%s443_s3] sm:$0xff]  ;;  %274 = vset.pattern.permute.xlu0 %v307_v1  ;;  %260 = vmatpush.xpose.msk.msra.mxu0 %vm79_vm0, %v30_v0  ;;  %v24_v6 = vld [vmem:[%s441_s1 + $0x10] sm:$0xff] }
   0x3   :  { %v31_v4 = vld [vmem:[%s442_s2] sm:$0xff]  ;;  %269 = vmatpush.xpose.msk.msra.mxu1 %vm79_vm0, %v30_v0  ;;  %270 = vmatpush.xpose.msk.msra.mxu2 %vm79_vm0, %v30_v0  ;;  %v28_v8 = vld [vmem:[%s441_s1 + $0x30] sm:$0xff] }
   0x4   :  { %v22_v5 = vld [vmem:[%s441_s1] sm:$0xff]  ;;  %166 = vperm.xlu2 %276, %v156_v2   ;;  %51 = vperm.xlu1 %275, %v33_v3  }
   0x5   :  { %v26_v7 = vld [vmem:[%s441_s1 + $0x20] sm:$0xff]  ;;  %41 = vperm.xlu0 %274, %v31_v4   ;;  %261 = vmatmul.msk.f32.vlgmr.msra.gmra.mxu0 %vm79_vm0, %v22_v5 }
   0x6   :  { %263 = vmatmul.msk.f32.vlgmr.msra.gmra.mxu1 %vm79_vm0, %v24_v6  ;;  %265 = vmatmul.msk.f32.vlgmr.msra.gmra.mxu2 %vm79_vm0, %v26_v7 }
   0x7   :  { %271 = vmatpush.xpose.msk.msra.mxu3 %vm79_vm0, %v30_v0 }
   0x8   :  { %11 = vsyncpa [#allocation4], 0  ;;  %v157_v9 = vld [vmem:[%s443_s3 + $0x8] sm:$0xff]  ;;  %v34_v10 = vld [vmem:[%s442_s2 + $0x18] sm:$0xff]  ;;  %vm212_vm1 = vcmask 64512   ;;  %s308_s15 = smov [#allocation3]  }
   0x9   :  { %v32_v11 = vld [vmem:[%s442_s2 + $0x8] sm:$0xff]  ;;  %v25_v13 = vld [vmem:[%s441_s1 + $0x18] sm:$0xff]  ;;  %v158_v17 = vld [vmem:[%s443_s3 + $0x10] sm:$0xff]  ;;  %s249_s16 = sshll.u32 %s308_s15, 4  ;;  %s251_s19 = sshll.u32 %s445_s5, 4  ;;  %vm242_vm2 = vcmask 57344   ;;  %s250_s16 = int_to_ptr.vmem [resolvable:$true] %s249_s16  ;;  %s252_s19 = int_to_ptr.hbm [resolvable:$true] %s251_s19 }
   0xa   :  { %267 = vmatmul.msk.f32.vlgmr.msra.gmra.mxu3 %vm79_vm0, %v28_v8  ;;  %v23_v12 = vld [vmem:[%s441_s1 + $0x8] sm:$0xff]  ;;  %v29_v15 = vld [vmem:[%s441_s1 + $0x38] sm:$0xff]  ;;  %v35_v18 = vld [vmem:[%s442_s2 + $0x20] sm:$0xff] }
   0xb   :  { %v27_v14 = vld [vmem:[%s441_s1 + $0x28] sm:$0xff]  ;;  %v160_v19 = vld [vmem:[%s443_s3 + $0x20] sm:$0xff]  ;;  %v37_v20 = vld [vmem:[%s442_s2 + $0x30] sm:$0xff] }
   0xc   :  { %171 = vperm.xlu2 %276, %v157_v9   ;;  %56 = vperm.xlu1 %275, %v34_v10   ;;  %v36_v16 = vld [vmem:[%s442_s2 + $0x28] sm:$0xff]  ;;  %v159_v21 = vld [vmem:[%s443_s3 + $0x18] sm:$0xff]  ;;  %v162_v22 = vld [vmem:[%s443_s3 + $0x30] sm:$0xff] }
   0xd   :  { %46 = vperm.xlu0 %274, %v32_v11   ;;  %262 = vmatmul.msk.f32.gmra.mxu0 %vm79_vm0, %v23_v12  ;;  %v161_v23 = vld [vmem:[%s443_s3 + $0x28] sm:$0xff]  ;;  %v38_v24 = vld [vmem:[%s442_s2 + $0x38] sm:$0xff] }
   0xe   :  { %264 = vmatmul.msk.f32.gmra.mxu1 %vm79_vm0, %v25_v13  ;;  %266 = vmatmul.msk.f32.gmra.mxu2 %vm79_vm0, %v27_v14  ;;  %v163_v25 = vld [vmem:[%s443_s3 + $0x38] sm:$0xff] }
  0x12   :  { %268 = vmatmul.msk.f32.gmra.mxu3 %vm79_vm0, %v29_v15 }
  0x14   :  { %66 = vperm.xlu2 %276, %v36_v16   ;;  %176 = vperm.xlu1 %275, %v158_v17  }
  0x15   :  { %61 = vperm.xlu0 %274, %v35_v18  }
  0x1c   :  { %186 = vperm.xlu2 %276, %v160_v19   ;;  %71 = vperm.xlu1 %275, %v37_v20  }
  0x1d   :  { %181 = vperm.xlu0 %274, %v159_v21  }
  0x24   :  { %196 = vperm.xlu2 %276, %v162_v22   ;;  %191 = vperm.xlu1 %275, %v161_v23  }
  0x25   :  { %76 = vperm.xlu0 %274, %v38_v24  }
  0x2d   :  { %201 = vperm.xlu0 %274, %v163_v25  }
  0x5e   :  { %v167_v26 = vpop.permute.xlu2 %166 }
  0x66   :  { %v172_v29 = vpop.permute.xlu2 %171 }
  0x6e   :  { %v67_v36 = vpop.permute.xlu2 %66 }
  0x76   :  { %v52_v27 = vpop.permute.xlu1 %51  ;;  %v187_v56 = vpop.permute.xlu2 %186 }
  0x77   :  { %v42_v28 = vpop.permute.xlu0 %41 }
  0x7e   :  { %v57_v30 = vpop.permute.xlu1 %56  ;;  %v197_v15 = vpop.permute.xlu2 %196 }
  0x7f   :  { %v47_v31 = vpop.permute.xlu0 %46 }
  0x82   :  { %v124_v32 = vpop.f32.mrf.mxu0 }
  0x83   :  { %v130_v33 = vpop.f32.mrf.mxu1  ;;  %v125_v34 = vadd.f32 %v124_v32, %v42_v28 }
  0x84   :  { %v131_v37 = vadd.f32 %v130_v33, %v52_v27 }
  0x85   :  { %v148_v39 = vmax.f32 %v125_v34, 0.0 }
  0x86   :  { %v177_v35 = vpop.permute.xlu1 %176  ;;  %v150_v42 = vmax.f32 %v131_v37, 0.0 }
  0x87   :  { %v62_v38 = vpop.permute.xlu0 %61  ;;  %v204_v47 = vmul.f32 %v167_v26, %v148_v39 }
  0x88   :  { %v206_v52 = vmul.f32 %v177_v35, %v150_v42 }
  0x89   :  { %v136_v40 = vpop.f32.mrf.mxu2  ;;  %v213_v57 = vsel %vm212_vm1, %v204_v47, 0.0 }
  0x8a   :  { %v127_v41 = vpop.f32.mrf.mxu0  ;;  %v137_v45 = vadd.f32 %v136_v40, %v62_v38  ;;  %v216_v63 = vsel %vm212_vm1, %v206_v52, 0.0 }
  0x8b   :  { %v128_v43 = vadd.f32 %v127_v41, %v47_v31  ;;  %v133_v44 = vpop.f32.mrf.mxu1 }
  0x8c   :  { %v134_v46 = vadd.f32 %v133_v44, %v57_v30  ;;  %v152_v55 = vmax.f32 %v137_v45, 0.0  ;;  %v235_v30 = vstv %s444_s4 }
  0x8d   :  { %v149_v48 = vmax.f32 %v128_v43, 0.0  ;;  %v142_v49 = vpop.f32.mrf.mxu3 }
  0x8e   :  { %v151_v50 = vmax.f32 %v134_v46, 0.0  ;;  %v72_v51 = vpop.permute.xlu1 %71  ;;  %v208_v0 = vmul.f32 %v187_v56, %v152_v55 }
  0x8f   :  { %v205_v53 = vmul.f32 %v172_v29, %v149_v48  ;;  %v182_v54 = vpop.permute.xlu0 %181  ;;  %v143_v2 = vadd.f32 %v142_v49, %v72_v51 }
  0x90   :  { %v207_v59 = vmul.f32 %v182_v54, %v151_v50  ;;  %v220_v10 = vsel %vm212_vm1, %v208_v0, 0.0 }
  0x91   :  { %v214_v58 = vsel %vm212_vm1, %v205_v53, 0.0  ;;  %v139_v60 = vpop.f32.mrf.mxu2  ;;  %v154_v11 = vmax.f32 %v143_v2, 0.0 }
  0x92   :  { %v215_v61 = vadd.f32 %v214_v58, %v213_v57  ;;  %v140_v62 = vadd.f32 %v139_v60, %v67_v36  ;;  %v218_v4 = vsel %vm212_vm1, %v207_v59, 0.0 }
  0x93   :  { %v210_v16 = vmul.f32 %v197_v15, %v154_v11 }
  0x94   :  { %v217_v1 = vadd.f32 %v216_v63, %v215_v61  ;;  %v153_v3 = vmax.f32 %v140_v62, 0.0 }
  0x95   :  { %v145_v9 = vpop.f32.mrf.mxu3  ;;  %v224_v20 = vsel %vm212_vm1, %v210_v16, 0.0 }
  0x96   :  { %v219_v5 = vadd.f32 %v218_v4, %v217_v1  ;;  %v192_v6 = vpop.permute.xlu1 %191 }
  0x97   :  { %v209_v7 = vmul.f32 %v192_v6, %v153_v3  ;;  %v77_v8 = vpop.permute.xlu0 %76 }
  0x98   :  { %v221_v12 = vadd.f32 %v220_v10, %v219_v5  ;;  %v146_v14 = vadd.f32 %v145_v9, %v77_v8 }
  0x99   :  { %v222_v13 = vsel %vm212_vm1, %v209_v7, 0.0 }
  0x9a   :  { %v223_v17 = vadd.f32 %v222_v13, %v221_v12  ;;  %v155_v18 = vmax.f32 %v146_v14, 0.0 }
  0x9c   :  { %v225_v22 = vadd.f32 %v224_v20, %v223_v17 }
  0x9f   :  { %v202_v19 = vpop.permute.xlu0 %201 }
  0xa0   :  { %v211_v21 = vmul.f32 %v202_v19, %v155_v18 }
  0xa2   :  { %v226_v23 = vsel %vm212_vm1, %v211_v21, 0.0 }
  0xa3   :  { %v227_v24 = vadd.f32 %v226_v23, %v225_v22 }
  0xa5   :  { %v228_v25 = vrot.slane %v227_v24, 4 }
  0xa7   :  { %v229_v26 = vadd.f32 %v228_v25, %v227_v24 }
  0xa9   :  { %v230_v27 = vrot.slane %v229_v26, 2 }
  0xab   :  { %v231_v28 = vadd.f32 %v230_v27, %v229_v26 }
  0xad   :  { %v232_v29 = vrot.slane %v231_v28, 1 }
  0xaf   :  { %v233_v31 = vadd.f32 %v232_v29, %v231_v28 }
  0xb1   :  { %v236_v32 = vadd.f32 %v235_v30, %v233_v31 }
  0xb3   :  { %v237_v33 = vsub.f32 0.0, %v236_v32 }
  0xb5   :  { %v238_v34 = vmul.f32 1.442695, %v237_v33 }
  0xb7   :  { %277 = vpow2.f32 %v238_v34 }
  0xbd   :  { %v278_v35 = vpop.eup %277 }
  0xbe   :  { %v240_v36 = vadd.f32 1.0, %v278_v35 }
  0xc0   :  { %279 = vrcp.f32 %v240_v36 }
  0xc6   :  { %v280_v37 = vpop.eup %279 }
  0xc7   :  { %243 = vst.msk [vmem:[#allocation3] sm:$0x1] %vm242_vm2, %v280_v37 }
  0xc8   :  { %254 = dma.vmem_to_hbm [thread:$0]  %s250_s16, 16, %s252_s19, [#allocation4]  }
  0xc9   :  { %305 = dma.done.wait [#allocation4], 16  }
  0xca   :  { %306 = vsyncadd [#allocation4], 4294967280 }
  0xcb   :  { %259 = vsyncpa [#allocation4], 1 }

</bundles_post_ra>
